<compile_context>
chip_gen: v6e
topology: v6e:2x2x1
jax: 0.10.0
libtpu: 0.0.40
codegen_flags: <defaults>
</compile_context>

<pallas_src>
import functools

import jax
import jax.numpy as jnp
from jax import lax
from jax.experimental import pallas as pl
from jax.experimental.pallas import tpu as pltpu


def _focal_kernel(x_ref, t_ref, a_ref, o_ref, *,
                  gamma, tile_l, true_l, grid_inner, ragged):
    """One (batch, pixel-split, pixel-tile) grid step.

    Classes on sublanes, pixels on lanes.  The output block is constant along the
    last (reduction) grid axis, so o_ref itself is the accumulator."""
    p = pl.program_id(1)
    k = pl.program_id(2)

    @pl.when(k == 0)
    def _():
        o_ref[...] = jnp.zeros_like(o_ref)

    x = x_ref[0].astype(jnp.float32)      # (C, TL) logits (f32 cast stays in VMEM)
    t = t_ref[0]                          # (1, TL) int32 class indices
    C, TL = x.shape

    # log_softmax along the class (sublane) axis; pixels stay per-lane.
    m = jnp.max(x, axis=0, keepdims=True)                       # (1, TL)
    z = x - m                                                   # (C, TL)
    e = jnp.exp(z)                                              # (C, TL)
    s = jnp.sum(e, axis=0, keepdims=True)                       # (1, TL)
    lse = jnp.log(s)                                            # (1, TL)

    # One-hot gather of the target-class logit and its alpha (no per-class loop).
    cls = lax.broadcasted_iota(jnp.int32, (C, TL), 0)
    onehot = cls == t                                           # (C, TL)
    zt = jnp.sum(jnp.where(onehot, z, 0.0), axis=0, keepdims=True)
    at = jnp.sum(jnp.where(onehot, a_ref[...], 0.0), axis=0, keepdims=True)
    logpt = zt - lse                                            # (1, TL)
    pt = jnp.exp(logpt)                                         # unweighted pt (as in PyTorch)
    # TODO(synk): if a v7x bundle dump shows EUP saturation, swap exp(logpt) for
    # jnp.sum(where(onehot, e, 0), 0, keepdims=True) * pl.reciprocal(s, approx=True).

    one_minus = 1.0 - pt
    if gamma == 2.0:
        focal = one_minus * one_minus       # avoid float pow (log+exp on the EUP)
    elif gamma == 1.0:
        focal = one_minus
    elif gamma == 0.0:
        focal = jnp.ones_like(one_minus)
    elif float(gamma).is_integer():
        focal = lax.integer_pow(one_minus, int(gamma))
    else:
        # pt can round just above 1.0 -> clamp so pow never sees a negative base.
        focal = jnp.maximum(one_minus, 0.0) ** gamma

    loss = -focal * (logpt * at)                                # (1, TL)

    if ragged:
        # Mask only the final per-pixel loss: every reduction above is along the
        # class (sublane) axis, so garbage in padded lanes never leaks across lanes.
        lane = lax.broadcasted_iota(jnp.int32, (1, TL), 1)
        valid = ((p * grid_inner + k) * tile_l + lane) < true_l
        loss = jnp.where(valid, loss, 0.0)

    o_ref[...] += jnp.sum(loss)


def _vmem_capacity_bytes():
    """Per-core VMEM capacity; conservative fallback if the query is unavailable."""
    try:
        info = pltpu.get_tpu_info()
        cap = getattr(info, "vmem_capacity_bytes", None)
        if cap:
            return int(cap)
    except Exception:
        pass
    return 64 << 20   # v7x per-TensorCore VMEM (smallest of v5e/v6e/v7x)


def _bytes_per_pixel(n_classes, in_itemsize):
    """Padding-aware VMEM bytes per pixel of a tile.

    Double-buffered pipeline blocks: logits padded to a multiple of 8 sublanes,
    int32 targets padded 1 -> 8 sublanes; plus ~5 full (C_pad, tile_l) f32
    elementwise temporaries (z, e, one-hot selects, cast copy)."""
    c_pad = ((n_classes + 7) // 8) * 8
    pipeline = 2 * (c_pad * in_itemsize + 8 * 4)
    temps = 5 * c_pad * 4
    return pipeline + temps


def _choose_tile_l(L, n_classes, itemsize, vmem_budget_bytes):
    """Pixel-tile length: lane-aligned, sized to the VMEM budget; full extent if small."""
    t = vmem_budget_bytes // _bytes_per_pixel(n_classes, itemsize)
    t = min(t, 1 << 17)          # keep the per-step DMA to a few MiB
    t = max(t, 128)
    t = (t // 128) * 128
    if t >= L:
        return L                 # single full-extent tile along the pixel axis
    return t


def focal_loss_softmax(logits_nchw, target_nhw, alpha=None, gamma=2.0, size_average=True):
    """Pallas implementation of FocalLoss_softmax.forward."""
    N, C, H, W = logits_nchw.shape
    L = H * W
    M = N * L
    gamma = float(gamma)   # the module stores gamma as a Python scalar

    # Free reshapes only: no transpose, no dtype conversion pass in HBM.
    x = logits_nchw.reshape(N, C, L)
    t = target_nhw.reshape(N, 1, L).astype(jnp.int32)
    if alpha is None:
        a = jnp.ones((C, 1), jnp.float32)
    else:
        a = jnp.asarray(alpha, jnp.float32).reshape(C, 1)

    itemsize = jnp.dtype(logits_nchw.dtype).itemsize
    vmem_cap = _vmem_capacity_bytes()
    tile_l = _choose_tile_l(L, C, itemsize, int(vmem_cap * 0.45))
    grid_l = pl.cdiv(L, tile_l)

    # Keep both v7x TensorCores busy: if the batch axis can't be split across cores,
    # split the pixel-tile axis into a small extra parallel factor instead.
    if N >= 2 or grid_l < 2:
        P = 1
    else:
        P = 2 if grid_l % 2 == 0 else 1
    grid_inner = grid_l // P
    ragged = (L % tile_l) != 0

    kernel = functools.partial(
        _focal_kernel, gamma=gamma, tile_l=tile_l, true_l=L,
        grid_inner=grid_inner, ragged=ragged)

    cost = pl.CostEstimate(
        flops=12 * C * M,
        transcendentals=(C + 2) * M,
        bytes_accessed=x.size * itemsize + t.size * 4 + C * 4 + N * P * 4)

    vmem_limit = min(int(vmem_cap * 0.9), 128 << 20)

    partials = pl.pallas_call(
        kernel,
        out_shape=jax.ShapeDtypeStruct((N, P, 1, 1), jnp.float32),
        grid=(N, P, grid_inner),
        in_specs=[
            # logits: lane-dense pixels, classes on sublanes
            pl.BlockSpec((1, C, tile_l), lambda i, p, k: (i, 0, p * grid_inner + k)),
            # targets: lane-dense pixels
            pl.BlockSpec((1, 1, tile_l), lambda i, p, k: (i, 0, p * grid_inner + k)),
            # alpha: small (C, 1) column resident in VMEM
            pl.BlockSpec((C, 1), lambda i, p, k: (0, 0)),
        ],
        out_specs=pl.BlockSpec((1, 1, 1, 1), lambda i, p, k: (i, p, 0, 0)),
        compiler_params=pltpu.CompilerParams(
            dimension_semantics=("parallel", "parallel", "arbitrary"),
            vmem_limit_bytes=vmem_limit),
        cost_estimate=cost,
    )(x, t, a)

    total = jnp.sum(partials)
    if size_average:
        return total / jnp.float32(M)
    return total


def _reference(logits_nchw, target_nhw, alpha, gamma=2.0):
    """Pure-JAX reference mirroring the PyTorch module."""
    N, C, H, W = logits_nchw.shape
    x = jnp.transpose(logits_nchw.reshape(N, C, H * W), (0, 2, 1)).reshape(-1, C)
    x = x.astype(jnp.float32)
    t = target_nhw.reshape(-1).astype(jnp.int32)
    a = jnp.asarray(alpha, jnp.float32)
    logp = jax.nn.log_softmax(x, axis=1)
    logpt = jnp.take_along_axis(logp, t[:, None], axis=1)[:, 0]
    pt = jnp.exp(logpt)
    at = a[t]
    loss = -1.0 * (1.0 - pt) ** gamma * (logpt * at)
    return loss.mean()


if __name__ == "__main__":
    key = jax.random.PRNGKey(0)
    k1, k2 = jax.random.split(key)

    N, C, H, W = 2, 4, 16, 16
    logits = jax.random.normal(k1, (N, C, H, W), dtype=jnp.float32)
    target = jax.random.randint(k2, (N, H, W), 0, C, dtype=jnp.int32)

    alpha = [0.25, 0.5, 0.75, 1.0]
    gamma = 2.0

    out = focal_loss_softmax(logits, target, alpha, gamma)
    out = jax.block_until_ready(out)

    ref = _reference(logits, target, alpha, gamma)
    assert jnp.allclose(out, ref, rtol=1e-5, atol=1e-6), (out, ref)

    print("KERNEL_OK")
</pallas_src>

<mosaic_0001>
module attributes {stable_mosaic.version = 11 : i64} {
  func.func @_focal_kernel(%arg0: i32, %arg1: i32, %arg2: i32, %arg3: memref<1x4x256xf32, #tpu.memory_space<vmem>>, %arg4: memref<1x1x256xi32, #tpu.memory_space<vmem>>, %arg5: memref<4x1xf32, #tpu.memory_space<vmem>>, %arg6: memref<1x1x1x1xf32, #tpu.memory_space<vmem>>) attributes {dimension_semantics = [#tpu.dimension_semantics<parallel>, #tpu.dimension_semantics<parallel>, #tpu.dimension_semantics<arbitrary>], iteration_bounds = array<i64: 2, 1, 1>, scalar_prefetch = 0 : i64, scratch_operands = 0 : i64, tpu.core_type = #tpu.core_type<tc>, window_params = [{transform_indices = @transform_0, window_bounds = array<i64: 1, 4, 256>}, {transform_indices = @transform_1, window_bounds = array<i64: 1, 1, 256>}, {pipeline_mode = #tpu.pipeline_mode<synchronous>, transform_indices = @transform_2, window_bounds = array<i64: 4, 1>}, {transform_indices = @transform_3, window_bounds = array<i64: 1, 1, 1, 1>}]} {
    %c0_i32 = arith.constant 0 : i32
    %0 = arith.cmpi eq, %arg2, %c0_i32 : i32
    %1 = arith.extui %0 : i1 to i32
    %c0_i32_0 = arith.constant 0 : i32
    %2 = arith.cmpi ne, %1, %c0_i32_0 : i32
    scf.if %2 {
      %cst_24 = arith.constant 0.000000e+00 : f32
      %46 = vector.broadcast %cst_24 : f32 to vector<1x1x1x1xf32>
      %c0_25 = arith.constant 0 : index
      %c0_26 = arith.constant 0 : index
      %c0_27 = arith.constant 0 : index
      %c0_28 = arith.constant 0 : index
      %47 = vector.load %arg6[%c0_25, %c0_26, %c0_27, %c0_28] : memref<1x1x1x1xf32, #tpu.memory_space<vmem>>, vector<1x1x1x1xf32>
      tpu.vector_store %arg6[%c0_25, %c0_26, %c0_27, %c0_28], %46 {strides = array<i32>} : memref<1x1x1x1xf32, #tpu.memory_space<vmem>>, vector<1x1x1x1xf32>,
    } else {
    }
    %c0 = arith.constant 0 : index
    %c0_1 = arith.constant 0 : index
    %c0_2 = arith.constant 0 : index
    %3 = vector.load %arg3[%c0, %c0_1, %c0_2] : memref<1x4x256xf32, #tpu.memory_space<vmem>>, vector<1x4x256xf32>
    %4 = vector.shape_cast %3 : vector<1x4x256xf32> to vector<4x256xf32>
    %c0_3 = arith.constant 0 : index
    %c0_4 = arith.constant 0 : index
    %c0_5 = arith.constant 0 : index
    %5 = vector.load %arg4[%c0_3, %c0_4, %c0_5] : memref<1x1x256xi32, #tpu.memory_space<vmem>>, vector<1x1x256xi32>
    %6 = vector.shape_cast %5 : vector<1x1x256xi32> to vector<1x256xi32>
    %cst = arith.constant dense<0xFF800000> : vector<256xf32>
    %7 = vector.multi_reduction <maximumf>, %4, %cst [0] : vector<4x256xf32> to vector<256xf32>
    %8 = vector.shape_cast %7 : vector<256xf32> to vector<1x256xf32>
    %9 = vector.broadcast %8 : vector<1x256xf32> to vector<4x256xf32>
    %10 = arith.subf %4, %9 : vector<4x256xf32>
    %11 = math.exp %10 : vector<4x256xf32>
    %cst_6 = arith.constant dense<0.000000e+00> : vector<256xf32>
    %12 = vector.multi_reduction <add>, %11, %cst_6 [0] : vector<4x256xf32> to vector<256xf32>
    %13 = vector.shape_cast %12 : vector<256xf32> to vector<1x256xf32>
    %14 = math.log %13 : vector<1x256xf32>
    %15 = tpu.iota {dimensions = array<i32: 0>} : vector<4x256xi32>
    %16 = vector.broadcast %6 : vector<1x256xi32> to vector<4x256xi32>
    %17 = arith.cmpi eq, %15, %16 : vector<4x256xi32>
    %cst_7 = arith.constant 0.000000e+00 : f32
    %18 = vector.broadcast %cst_7 : f32 to vector<4x256xf32>
    %19 = arith.select %17, %10, %18 : vector<4x256xi1>, vector<4x256xf32>
    %cst_8 = arith.constant dense<0.000000e+00> : vector<256xf32>
    %20 = vector.multi_reduction <add>, %19, %cst_8 [0] : vector<4x256xf32> to vector<256xf32>
    %21 = vector.shape_cast %20 : vector<256xf32> to vector<1x256xf32>
    %c0_9 = arith.constant 0 : index
    %c0_10 = arith.constant 0 : index
    %22 = vector.load %arg5[%c0_9, %c0_10] : memref<4x1xf32, #tpu.memory_space<vmem>>, vector<4x1xf32>
    %cst_11 = arith.constant 0.000000e+00 : f32
    %23 = vector.shape_cast %22 : vector<4x1xf32> to vector<4x1xf32>
    %24 = vector.broadcast %23 : vector<4x1xf32> to vector<4x256xf32>
    %25 = vector.broadcast %cst_11 : f32 to vector<4x256xf32>
    %26 = arith.select %17, %24, %25 : vector<4x256xi1>, vector<4x256xf32>
    %cst_12 = arith.constant dense<0.000000e+00> : vector<256xf32>
    %27 = vector.multi_reduction <add>, %26, %cst_12 [0] : vector<4x256xf32> to vector<256xf32>
    %28 = vector.shape_cast %27 : vector<256xf32> to vector<1x256xf32>
    %29 = arith.subf %21, %14 : vector<1x256xf32>
    %30 = math.exp %29 : vector<1x256xf32>
    %cst_13 = arith.constant 1.000000e+00 : f32
    %31 = vector.broadcast %cst_13 : f32 to vector<1x256xf32>
    %32 = arith.subf %31, %30 : vector<1x256xf32>
    %33 = arith.mulf %32, %32 : vector<1x256xf32>
    %cst_14 = arith.constant 0.000000e+00 : f32
    %34 = vector.broadcast %cst_14 : f32 to vector<1x256xf32>
    %35 = arith.subf %34, %33 : vector<1x256xf32>
    %36 = arith.mulf %29, %28 : vector<1x256xf32>
    %37 = arith.mulf %35, %36 : vector<1x256xf32>
    %c0_15 = arith.constant 0 : index
    %c0_16 = arith.constant 0 : index
    %c0_17 = arith.constant 0 : index
    %c0_18 = arith.constant 0 : index
    %38 = vector.load %arg6[%c0_15, %c0_16, %c0_17, %c0_18] : memref<1x1x1x1xf32, #tpu.memory_space<vmem>>, vector<1x1x1x1xf32>
    %39 = vector.shape_cast %37 : vector<1x256xf32> to vector<1x1x256xf32>
    %cst_19 = arith.constant dense<0.000000e+00> : vector<1xf32>
    %40 = vector.multi_reduction <add>, %39, %cst_19 [1, 2] : vector<1x1x256xf32> to vector<1xf32>
    %41 = vector.shape_cast %40 : vector<1xf32> to vector<1x1x1xf32>
    %42 = vector.extract %41[0, 0, 0] : f32 from vector<1x1x1xf32>
    %43 = vector.broadcast %42 : f32 to vector<1x1x1x1xf32>
    %44 = arith.addf %38, %43 : vector<1x1x1x1xf32>
    %c0_20 = arith.constant 0 : index
    %c0_21 = arith.constant 0 : index
    %c0_22 = arith.constant 0 : index
    %c0_23 = arith.constant 0 : index
    %45 = vector.load %arg6[%c0_20, %c0_21, %c0_22, %c0_23] : memref<1x1x1x1xf32, #tpu.memory_space<vmem>>, vector<1x1x1x1xf32>
    tpu.vector_store %arg6[%c0_20, %c0_21, %c0_22, %c0_23], %44 {strides = array<i32>} : memref<1x1x1x1xf32, #tpu.memory_space<vmem>>, vector<1x1x1x1xf32>,
    return
  }
  func.func @transform_0(%arg0: i32, %arg1: i32, %arg2: i32) -> (i32, i32, i32) {
    %c1_i32 = arith.constant 1 : i32
    %0 = arith.muli %arg1, %c1_i32 : i32
    %1 = arith.addi %0, %arg2 : i32
    %c0_i32 = arith.constant 0 : i32
    %c0_i32_0 = arith.constant 0 : i32
    return %arg0, %c0_i32, %1 : i32, i32, i32
  }
  func.func @transform_1(%arg0: i32, %arg1: i32, %arg2: i32) -> (i32, i32, i32) {
    %c1_i32 = arith.constant 1 : i32
    %0 = arith.muli %arg1, %c1_i32 : i32
    %1 = arith.addi %0, %arg2 : i32
    %c0_i32 = arith.constant 0 : i32
    %c0_i32_0 = arith.constant 0 : i32
    return %arg0, %c0_i32, %1 : i32, i32, i32
  }
  func.func @transform_2(%arg0: i32, %arg1: i32, %arg2: i32) -> (i32, i32) {
    %c0_i32 = arith.constant 0 : i32
    %c0_i32_0 = arith.constant 0 : i32
    %c0_i32_1 = arith.constant 0 : i32
    return %c0_i32, %c0_i32_0 : i32, i32
  }
  func.func @transform_3(%arg0: i32, %arg1: i32, %arg2: i32) -> (i32, i32, i32, i32) {
    %c0_i32 = arith.constant 0 : i32
    %c0_i32_0 = arith.constant 0 : i32
    %c0_i32_1 = arith.constant 0 : i32
    return %arg0, %arg1, %c0_i32, %c0_i32_0 : i32, i32, i32, i32
  }
}

</mosaic_0001>

<bundles_post_ra>
// kernel: tpu_custom_call.1
= control target key start
LH: loop header
LB: loop body
LE: loop exit
PB: predicated region body
PF: predicated region fallthrough
CT: control target
= control target key end

     0   :  { %8 = vsyncpa [#allocation3], 0  ;;  %s810_s0 = inlined_call_operand.hbm [shape: f32[2,4,256], index: 0, kind: input, shape index: {}]   ;;  %s811_s1 = inlined_call_operand.vmem [shape: s32[2,1,256], index: 1, kind: input, shape index: {}]   ;;  %s812_s2 = inlined_call_operand.vmem [shape: f32[4,1], index: 2, kind: input, shape index: {}]   ;;  %s813_s3 = inlined_call_operand.vmem [shape: f32[2,1,1,1], index: 3, kind: output, shape index: {}]  }
   0x1   :  { %10 = vsyncpa [#allocation3 + $0x1], 0  ;;  %s688_s12 = smov 0   ;;  %s690_s13 = smov 0  }
   0x2   :  { %s692_s14 = smov 0   ;;  %s694_s15 = smov 0  }
   0x3   :  { %s696_s16 = smov 0   ;;  %s698_s17 = smov 0  }
   0x4 LB: > { %s501_s18 = sadd.s32 4294967295, %s663_s17   ;;  %s35_s19 = sadd.s32 1, %s659_s16  ;;  %s663_s17 = sphi %s698_s17, %s16_s17   ;;  %s659_s16 = sphi %s696_s16, %s821_s16   ;;  %s655_s15 = sphi %s694_s15, %s820_s15   ;;  %s651_s14 = sphi %s692_s14, %s819_s14   ;;  %s647_s13 = sphi %s690_s13, %s818_s13   ;;  %s643_s12 = sphi %s688_s12, %s817_s12  }
   0x5   : > { %p37_p0 = scmp.ge.s32.totalorder %s35_s19, 2  ;;  %s46_s20 = sadd.s32 1, %s651_s14 }
   0x6   : > { %p53_p1 = scmp.ne.s32.totalorder %s651_s14, %s647_s13  ;;  %p54_p2 = scmp.eq.s32.totalorder %s663_s17, 0 }
   0x7   : > { %s823_s19 = smov (%p37_p0, %s35_s19), 0  ;;  %p59_p4 = scmp.ne.s32.totalorder %s647_s13, %s643_s12 }
   0x8   : > { %p724_p3 = por %p54_p2, %p53_p1  ;;  %s41_s22 = ssub.s32 %s659_s16, %s823_s19 }
   0x9   : > { %p60_p5 = scmp.eq.s32.totalorder %s501_s18, 0  ;;  %p44_p6 = scmp.eq.s32.totalorder %s41_s22, 0 }
   0xa   : > { %p522_p8 = scmp.lt.s32.totalorder %s663_s17, 2  ;;  %s165_s25 = sand.u32 1, %s651_s14  }
   0xb   : > { %p731_p7 = por %p60_p5, %p59_p4  ;;  %s513_s26 = sshll.u32 %s659_s16, 7 }
   0xc   : > { %s737_s24 = scalar_select %p44_p6, %s651_s14, %s46_s20  }
   0xd   : > { %s505_s27 = sshll.u32 %s165_s25, 3  ;;  %s178_s30 = scalar_lea.hbm %s810_s0, %s513_s26 }
   0xe   : > { %s169_s4 = scalar_lea.vmem [#allocation2], %s505_s27  ;;  %p746_p9 = pnand %p522_p8, %p724_p3 }
   0xf   : > { %s180_s5 = sshll.u32 %s169_s4, 4  ;;  %p508_p10 = scmp.ge.s32.totalorder %s663_s17, 1  ;;  %s181_s5 = int_to_ptr.vmem [resolvable:$true] %s180_s5 }
  0x10   : > { %p199_p11 = scmp.lt.s32.totalorder %s663_s17, 3  ;;  %s166_s7 = scalar_lea.sflag [#allocation3], %s165_s25 }
  0x11   : > { %p587_p12 = pneg %p746_p9  ;;  %s598_s8 = scalar_lea.vmem %s181_s5, 128 }
  0x12   : > { %p599_p13 = scmp.ne.s32.totalorder %s181_s5, %s598_s8  ;;  %s665_s9 = smov [#allocation2]  }
  0x13   : > { %s603_s10 = sshll.u32 %s665_s9, 4  ;;  %s604_s10 = int_to_ptr.vmem [resolvable:$false] %s603_s10 }
  0x14   : > { %p601_p0 = pnand %p599_p13, %p587_p12  ;;  %s605_s11 = scalar_lea.vmem %s604_s10, 256 }
  0x15   : > { %p606_p2 = scmp.lt.s32.totalorder %s181_s5, %s604_s10  ;;  %p607_p3 = scmp.lt.s32.totalorder %s605_s11, %s598_s8 }
  0x16   : > { %p602_p1 = pneg %p601_p0 }
  0x17   : > { %p608_p4 = por %p607_p3, %p606_p2 }
  0x19   : > { %p609_p5 = pnand %p608_p4, %p602_p1 }
  0x1b   : > { %612 = shalt.err (!%p609_p5)
}
  0x1c   : > { %521 = dma.hbm_to_vmem [thread:$0]  (!%p746_p9), %s178_s30, 128, %s181_s5, %s166_s7  }
  0x1d   : > { %p200_p6 = pnand %p508_p10, %p199_p11 }
  0x1e   : > { %s205_s12 = sand.u32 (!%p200_p6), 1, %s647_s13  }
  0x1f   : > { %203 = sbr.rel (%p200_p6) target bundleno = 388 (0x184), region = 32  ;;  %s509_s18 = sshll.u32 (!%p200_p6), %s205_s12, 3 }
  0x20   : > { %s206_s20 = scalar_lea.sflag (!%p200_p6), [#allocation3], %s205_s12  ;;  %s209_s21 = scalar_lea.vmem (!%p200_p6), [#allocation2], %s509_s18 }
  0x24   : > { %638 = dma.done.wait (%p731_p7), %s206_s20, 128  }
  0x25   : > { %640 = vsyncadd (%p731_p7), %s206_s20, 4294967168  ;;  %v666_v0 = vmov 0   ;;  %vm272_vm0 = vcmask 1043456   ;;  %v346_v1 = vld [vmem:[%s812_s2] sm:$0xf]  ;;  %p246_p7 = scmp.lt.s32.totalorder %s655_s15, 1  ;;  %v315_v23 = vlaneseq }
  0x26   : > { %573 = vset.pattern.permute.xlu0 %v666_v0  ;;  %v267_v2 = vld [vmem:[%s209_s21] sm:$0xff]  ;;  %vm385_vm3 = vcmask 1040384   ;;  %vm265_vm4 = vcmask 0  }
  0x27   : > { %349 = vperm.xlu0 %573, %v346_v1   ;;  %v270_v3 = vcombine.high %v267_v2, %v267_v2  ;;  %v273_v4 = vsel %vm272_vm0, %v267_v2, -inf  ;;  %s825_s15 = smov (!%p246_p7, %s655_s15), 1  ;;  %v316_v26 = vshrl.u32 %v315_v23, 7 }
  0x28   : > { %v274_v5 = vrot.slane %v273_v4, 4  ;;  %s510_s23 = sshll.u32 %s825_s15, 1  ;;  %s260_s4 = scalar_lea.vmem %s813_s3, %s825_s15 }
  0x29   : > { %v280_v6 = vsel %vm272_vm0, %v270_v3, -inf  ;;  %s252_s28 = scalar_lea.vmem %s811_s1, %s510_s23  ;;  %v319_v29 = vsub.s32 0, %v316_v26  ;;  %v323_v30 = vsub.s32 1, %v316_v26 }
  0x2a   : > { %v281_v7 = vrot.slane %v280_v6, 4  ;;  %v275_v8 = vmax.f32 %v273_v4, %v274_v5  ;;  %v268_v31 = vld [vmem:[%s252_s28] sm:$0x3] }
  0x2b   : > { %v320_v34 = vrot.slane %v268_v31, %v319_v29  ;;  %v324_v35 = vrot.slane %v268_v31, %v323_v30 }
  0x2c   : > { %v282_v9 = vmax.f32 %v280_v6, %v281_v7  ;;  %v276_v10 = vrot.slane %v275_v8, 2 }
  0x2d   : > { %vm325_vm1 = vcmp.eq.s32.totalorder %v316_v26, %v320_v34  ;;  %vm326_vm2 = vcmp.eq.s32.totalorder %v316_v26, %v324_v35 }
  0x2e   : > { %v283_v11 = vrot.slane %v282_v9, 2  ;;  %v277_v12 = vmax.f32 %v275_v8, %v276_v10 }
  0x30   : > { %v284_v13 = vmax.f32 %v282_v9, %v283_v11  ;;  %v278_v14 = vrot.slane %v277_v12, 1 }
  0x32   : > { %v285_v15 = vrot.slane %v284_v13, 1  ;;  %v279_v16 = vmax.f32 %v277_v12, %v278_v14 }
  0x34   : > { %v286_v17 = vmax.f32 %v284_v13, %v285_v15 }
  0x36   : > { %v289_v18 = vcombine.low %v279_v16, %v286_v17 }
  0x38   : > { %v291_v19 = vsub.f32 %v267_v2, %v289_v18 }
  0x3a   : > { %v292_v20 = vmul.f32 1.442695, %v291_v19  ;;  %v328_v38 = vcombine.high %v291_v19, %v291_v19  ;;  %v330_v41 = vsel %vm325_vm1, %v291_v19, 0.0 }
  0x3b   : > { %v332_v44 = vsel %vm272_vm0, %v330_v41, 0.0 }
  0x3c   : > { %575 = vpow2.f32 %v292_v20  ;;  %v331_v42 = vsel %vm326_vm2, %v328_v38, 0.0  ;;  %v333_v47 = vrot.slane %v332_v44, 4 }
  0x3d   : > { %v339_v46 = vsel %vm272_vm0, %v331_v42, 0.0 }
  0x3e   : > { %v340_v49 = vrot.slane %v339_v46, 4  ;;  %v334_v51 = vadd.f32 %v333_v47, %v332_v44 }
  0x40   : > { %v341_v52 = vadd.f32 %v340_v49, %v339_v46  ;;  %v335_v53 = vrot.slane %v334_v51, 2 }
  0x42   : > { %v342_v54 = vrot.slane %v341_v52, 2  ;;  %v336_v55 = vadd.f32 %v335_v53, %v334_v51 }
  0x44   : > { %v343_v56 = vadd.f32 %v342_v54, %v341_v52  ;;  %v337_v57 = vrot.slane %v336_v55, 1 }
  0x46   : > { %v344_v59 = vrot.slane %v343_v56, 1  ;;  %v338_v61 = vadd.f32 %v337_v57, %v336_v55 }
  0x48   : > { %v345_v63 = vadd.f32 %v344_v59, %v343_v56 }
  0x49   : > { %v576_v21 = vpop.eup %575 }
  0x4a   : > { %v295_v22 = vcombine.high %v576_v21, %v576_v21  ;;  %v297_v24 = vsel %vm272_vm0, %v576_v21, 0.0 }
  0x4b   : > { %v298_v27 = vrot.slane %v297_v24, 4 }
  0x4c   : > { %v304_v25 = vsel %vm272_vm0, %v295_v22, 0.0 }
  0x4d   : > { %v305_v28 = vrot.slane %v304_v25, 4  ;;  %v299_v32 = vadd.f32 %v298_v27, %v297_v24 }
  0x4f   : > { %v306_v33 = vadd.f32 %v305_v28, %v304_v25  ;;  %v300_v36 = vrot.slane %v299_v32, 2 }
  0x51   : > { %v307_v37 = vrot.slane %v306_v33, 2  ;;  %v301_v39 = vadd.f32 %v300_v36, %v299_v32 }
  0x53   : > { %v308_v40 = vadd.f32 %v307_v37, %v306_v33  ;;  %v302_v43 = vrot.slane %v301_v39, 1  ;;  %v667_v37 = vmov 0.0  }
  0x54   : > { %266 = vst.msk [vmem:[%s260_s4] sm:$0x1] %vm265_vm4, %v667_v37 }
  0x55   : > { %v309_v45 = vrot.slane %v308_v40, 1  ;;  %v303_v48 = vadd.f32 %v302_v43, %v301_v39 }
  0x57   : > { %v310_v50 = vadd.f32 %v309_v45, %v308_v40  ;;  %577 = vlog2.f32 %v303_v48 }
  0x59   : > { %579 = vlog2.f32 %v310_v50 }
  0x5b   : > { %v384_v45 = vld [vmem:[%s260_s4] sm:$0x1] }
  0x64   : > { %v578_v58 = vpop.eup %577 }
  0x65   : > { %v312_v62 = vmul.f32 0.6931472, %v578_v58 }
  0x66   : > { %v580_v60 = vpop.eup %579 }
  0x67   : > { %v314_v0 = vmul.f32 0.6931472, %v580_v60  ;;  %v368_v1 = vsub.f32 %v338_v61, %v312_v62 }
  0x69   : > { %v369_v2 = vsub.f32 %v345_v63, %v314_v0  ;;  %v370_v3 = vmul.f32 1.442695, %v368_v1 }
  0x6b   : > { %v372_v4 = vmul.f32 1.442695, %v369_v2  ;;  %581 = vpow2.f32 %v370_v3 }
  0x6d   : > { %583 = vpow2.f32 %v372_v4 }
  0x78   : > { %v582_v6 = vpop.eup %581 }
  0x79   : > { %v374_v16 = vsub.f32 1.0, %v582_v6 }
  0x7a   : > { %v584_v9 = vpop.eup %583 }
  0x7b   : > { %v375_v17 = vsub.f32 1.0, %v584_v9  ;;  %v376_v22 = vmul.f32 %v374_v16, %v374_v16 }
  0x7d   : > { %v377_v23 = vmul.f32 %v375_v17, %v375_v17  ;;  %v378_v28 = vsub.f32 0.0, %v376_v22 }
  0x7f   : > { %v379_v29 = vsub.f32 0.0, %v377_v23 }
  0xa2   : > { %v350_v5 = vpop.permute.xlu0 %349 }
  0xa3   : > { %v352_v7 = vsel %vm325_vm1, %v350_v5, 0.0  ;;  %v353_v8 = vsel %vm326_vm2, %v350_v5, 0.0 }
  0xa4   : > { %v354_v10 = vsel %vm272_vm0, %v352_v7, 0.0  ;;  %v361_v11 = vsel %vm272_vm0, %v353_v8, 0.0 }
  0xa5   : > { %v355_v12 = vrot.slane %v354_v10, 4  ;;  %v362_v13 = vrot.slane %v361_v11, 4 }
  0xa7   : > { %v356_v14 = vadd.f32 %v355_v12, %v354_v10  ;;  %v363_v15 = vadd.f32 %v362_v13, %v361_v11 }
  0xa9   : > { %v357_v18 = vrot.slane %v356_v14, 2  ;;  %v364_v19 = vrot.slane %v363_v15, 2 }
  0xab   : > { %v358_v20 = vadd.f32 %v357_v18, %v356_v14  ;;  %v365_v21 = vadd.f32 %v364_v19, %v363_v15 }
  0xad   : > { %v359_v24 = vrot.slane %v358_v20, 1  ;;  %v366_v25 = vrot.slane %v365_v21, 1 }
  0xaf   : > { %v360_v26 = vadd.f32 %v359_v24, %v358_v20  ;;  %v367_v27 = vadd.f32 %v366_v25, %v365_v21 }
  0xb1   : > { %v380_v30 = vmul.f32 %v368_v1, %v360_v26  ;;  %v381_v31 = vmul.f32 %v369_v2, %v367_v27 }
  0xb3   : > { %v382_v32 = vmul.f32 %v380_v30, %v378_v28  ;;  %v383_v33 = vmul.f32 %v381_v31, %v379_v29 }
  0xb5   : > { %v386_v34 = vsel %vm385_vm3, %v382_v32, 0.0  ;;  %v387_v35 = vsel %vm385_vm3, %v383_v33, 0.0 }
  0xb6   : > { %v388_v36 = vadd.f32 %v387_v35, %v386_v34 }
  0xb8   : > { %389 = vadd.xlane.f32.xlu0 %v388_v36 }
 0x141   : > { %v390_v38 = vpop.xlane.xlu0 %389 }
 0x142   : > { %v391_v39 = vrot.slane %v390_v38, 4 }
 0x144   : > { %v392_v40 = vadd.f32 %v391_v39, %v390_v38 }
 0x146   : > { %v393_v41 = vrot.slane %v392_v40, 2 }
 0x148   : > { %v394_v42 = vadd.f32 %v393_v41, %v392_v40 }
 0x14a   : > { %v395_v43 = vrot.slane %v394_v42, 1 }
 0x14c   : > { %v396_v44 = vadd.f32 %v395_v43, %v394_v42 }
 0x14e   : > { %514 = vpush %v396_v44 }
 0x17f   : > { %s515_s5 = spop %514 }
 0x180   : > { %v398_v46 = vstv %s515_s5 }
 0x181   : > { %v399_v47 = vadd.f32 %v398_v46, %v384_v45 }
 0x183   : > { %401 = vst.msk [vmem:[%s260_s4] sm:$0x1] %vm265_vm4, %v399_v47 }
 0x184 PF: > { %s16_s17 = sadd.s32 1, %s663_s17   ;;  %s817_s12 = smov %s647_s13 }
 0x185   : > { %p13_p8 = scmp.ge.s32.totalorder %s16_s17, 4   ;;  %s818_s13 = smov %s651_s14 }
 0x186   : > { %s819_s14 = smov %s737_s24  ;;  %s820_s15 = smov %s659_s16 }
 0x187   : > { %s821_s16 = smov %s823_s19  ;;  %15 = sbr.rel (!%p13_p8) target bundleno = 4 (0x4), region = 79 }
 0x18c   :  { %425 = vsyncpa [#allocation3], 1 }
 0x18d   :  { %427 = vsyncpa [#allocation3 + $0x1], 1 }

</bundles_post_ra>
